<compile_context>
chip_gen: v7x
topology: tpu7x:2x2x1
jax: 0.10.0
libtpu: 0.0.40
codegen_flags: <defaults>
</compile_context>

<pallas_src>
import jax
import jax.numpy as jnp
from jax.experimental import pallas as pl
from jax.experimental.pallas import tpu as pltpu

NF = 32            # hidden width (nf in the PyTorch module)
TILE_B = 4096      # batch lanes per grid step (multiple of 128; blocks stay tiny in VMEM)

# --- packed parameter slab layout: (SLAB_ROWS, NF) with 8-row-aligned sections ---
# Weights are stored (out_features, in_features) so the kernel computes h = W @ h.
ROW_W1 = 0         # (32, 3)  in cols 0:3   (cols 3:32 zero)
ROW_W2 = 32        # (32, 32)
ROW_W3 = 64        # (32, 32)
ROW_W4 = 96        # (32, 32)
ROW_W5 = 128       # (1, 32) in row 128; rows 129:136 zero padding
ROW_B = 136        # bias block (32 rows): col0=b1, col1=b2, col2=b3, col3=b4, col4[row0]=b5
SLAB_ROWS = 168


def pendulum_mlp_kernel(x_ref, w_ref, o_ref):
    """One batch tile of the full MLP, feature-major (batch on lanes).

    Matmuls on the MXU with f32 accumulation; bias/ReLU on the VPU in f32.
    All parameters come from a single VMEM-resident slab via static slices.
    """
    wdt = w_ref.dtype
    b = w_ref[ROW_B:ROW_B + NF, :].astype(jnp.float32)               # (32, 32) bias columns

    # encoder: Linear(3, nf) + ReLU   (Dropout == identity in eval mode)
    h = jnp.dot(w_ref[ROW_W1:ROW_W1 + NF, 0:3], x_ref[...],          # (32,3) @ (3,TILE_B)
                preferred_element_type=jnp.float32)
    h = jnp.maximum(h + b[:, 0:1], 0.0)                              # (32, TILE_B)

    # middle_layers: 3 x (Linear(nf, nf) + ReLU + Dropout)
    h = jnp.dot(w_ref[ROW_W2:ROW_W2 + NF, :], h.astype(wdt),
                preferred_element_type=jnp.float32)
    h = jnp.maximum(h + b[:, 1:2], 0.0)
    h = jnp.dot(w_ref[ROW_W3:ROW_W3 + NF, :], h.astype(wdt),
                preferred_element_type=jnp.float32)
    h = jnp.maximum(h + b[:, 2:3], 0.0)
    h = jnp.dot(w_ref[ROW_W4:ROW_W4 + NF, :], h.astype(wdt),
                preferred_element_type=jnp.float32)
    h = jnp.maximum(h + b[:, 3:4], 0.0)

    # fc: Linear(nf, 1) -- 8-row (sublane-aligned) W5 section, keep row 0 only
    y = jnp.dot(w_ref[ROW_W5:ROW_W5 + 8, :], h.astype(wdt),          # (8, TILE_B)
                preferred_element_type=jnp.float32)
    o_ref[...] = y[0:1, :] + b[0:1, 4:5]                             # lane-dense (1, TILE_B)


def _round_up(n, m):
    return ((n + m - 1) // m) * m


def pendulum_net_forward(x, w_slab, tile_b=TILE_B):
    """x: (B, 3); w_slab: (SLAB_ROWS, NF) packed parameters (see pack_params).

    Returns (B, 1) float32. Wrapper-side transpose/pad is layout plumbing only.
    """
    B = x.shape[0]
    x_t = x.T.astype(w_slab.dtype)                       # feature-major (3, B)

    # Tile: multiple of 128 lanes, capped so batches > 128 keep >= 2 grid steps
    # (so the "parallel" axis can shard across both TensorCores on v7x).
    bp128 = _round_up(max(B, 1), 128)
    tb = min(_round_up(tile_b, 128), max(128, _round_up(pl.cdiv(bp128, 2), 128)))
    Bp = _round_up(B, tb)
    if Bp != B:
        x_t = jnp.pad(x_t, ((0, 0), (0, Bp - B)))
    grid = (Bp // tb,)

    out = pl.pallas_call(
        pendulum_mlp_kernel,
        out_shape=jax.ShapeDtypeStruct((1, Bp), jnp.float32),
        grid=grid,
        in_specs=[
            pl.BlockSpec((3, tb), lambda i: (0, i)),                  # lane-dense input tile
            pl.BlockSpec((SLAB_ROWS, NF), lambda i: (0, 0)),          # weight slab, DMA'd once
        ],
        out_specs=pl.BlockSpec((1, tb), lambda i: (0, i)),            # lane-dense output tile
        compiler_params=pltpu.CompilerParams(
            dimension_semantics=("parallel",),                        # megacore sharding on v7x
        ),
    )(x_t, w_slab)

    return out[0, :B].reshape(B, 1)


def init_params(key, nf=NF):
    """Deterministic init mirroring PyTorch Linear default (uniform +-1/sqrt(fan_in)).
    Weights stored as (in_features, out_features); biases as (1, out_features)."""
    dims = [(3, nf), (nf, nf), (nf, nf), (nf, nf), (nf, 1)]
    params = []
    for (fan_in, fan_out) in dims:
        key, kw, kb = jax.random.split(key, 3)
        bound = 1.0 / jnp.sqrt(jnp.float32(fan_in))
        w = jax.random.uniform(kw, (fan_in, fan_out), jnp.float32, -bound, bound)
        b = jax.random.uniform(kb, (1, fan_out), jnp.float32, -bound, bound)
        params += [w, b]
    return params


def pack_params(params, dtype=jnp.float32):
    """Pack [w1,b1,...,w5,b5] into one (SLAB_ROWS, NF) slab.

    Weights go in transposed (out_features, in_features); biases as column
    vectors in the ROW_B block. Use dtype=jnp.bfloat16 on v6e/v7x to halve the
    HBM byte stream (the kernel still accumulates in f32).
    """
    w1, b1, w2, b2, w3, b3, w4, b4, w5, b5 = params
    slab = jnp.zeros((SLAB_ROWS, NF), jnp.float32)
    slab = slab.at[ROW_W1:ROW_W1 + NF, 0:3].set(w1.T)     # (32, 3)
    slab = slab.at[ROW_W2:ROW_W2 + NF, :].set(w2.T)
    slab = slab.at[ROW_W3:ROW_W3 + NF, :].set(w3.T)
    slab = slab.at[ROW_W4:ROW_W4 + NF, :].set(w4.T)
    slab = slab.at[ROW_W5, :].set(w5[:, 0])               # (32,1) weight as one row
    slab = slab.at[ROW_B:ROW_B + NF, 0].set(b1[0])
    slab = slab.at[ROW_B:ROW_B + NF, 1].set(b2[0])
    slab = slab.at[ROW_B:ROW_B + NF, 2].set(b3[0])
    slab = slab.at[ROW_B:ROW_B + NF, 3].set(b4[0])
    slab = slab.at[ROW_B, 4].set(b5[0, 0])
    return slab.astype(dtype)


def reference_forward(x, params):
    """Plain-JAX reference for sanity checking."""
    h = x
    for i in range(0, 8, 2):
        h = jnp.maximum(h @ params[i] + params[i + 1], 0.0)
    return h @ params[8] + params[9]


if __name__ == "__main__":
    key = jax.random.PRNGKey(0)
    kx, kp = jax.random.split(key)

    params = init_params(kp)
    w_slab = pack_params(params)                          # float32 slab

    # small batch (the shipped use-case): single grid step
    B = 8
    x = jax.random.normal(kx, (B, 3), jnp.float32)
    out = jax.block_until_ready(pendulum_net_forward(x, w_slab))
    ref = reference_forward(x, params)
    assert out.shape == (B, 1), out.shape
    assert jnp.allclose(out, ref, atol=1e-4, rtol=1e-4), "mismatch vs reference (B=8)"

    # larger, non-tile-multiple batch: exercises the grid (>=2 steps), padding,
    # and the lane-dense output path
    B2 = 1000
    x2 = jax.random.normal(kx, (B2, 3), jnp.float32)
    out2 = jax.block_until_ready(pendulum_net_forward(x2, w_slab))
    ref2 = reference_forward(x2, params)
    assert out2.shape == (B2, 1), out2.shape
    assert jnp.allclose(out2, ref2, atol=1e-4, rtol=1e-4), "mismatch vs reference (B=1000)"

    # bfloat16 slab/input (v6e/v7x byte-stream halving), f32 MXU accumulation
    w_slab_bf16 = pack_params(params, dtype=jnp.bfloat16)
    out3 = jax.block_until_ready(pendulum_net_forward(x2, w_slab_bf16))
    assert out3.shape == (B2, 1), out3.shape
    assert jnp.allclose(out3, ref2, atol=5e-2, rtol=5e-2), "bf16 path deviates too much"

    print("KERNEL_OK")
</pallas_src>

<mosaic_0001>
module attributes {stable_mosaic.version = 11 : i64} {
  func.func @pendulum_mlp_kernel(%arg0: i32, %arg1: memref<3x128xf32, #tpu.memory_space<vmem>>, %arg2: memref<168x32xf32, #tpu.memory_space<vmem>>, %arg3: memref<1x128xf32, #tpu.memory_space<vmem>>) attributes {dimension_semantics = [#tpu.dimension_semantics<parallel>], iteration_bounds = array<i64: 1>, scalar_prefetch = 0 : i64, scratch_operands = 0 : i64, tpu.core_type = #tpu.core_type<tc>, window_params = [{transform_indices = @transform_0, window_bounds = array<i64: 3, 128>}, {pipeline_mode = #tpu.pipeline_mode<synchronous>, transform_indices = @transform_1, window_bounds = array<i64: 168, 32>}, {transform_indices = @transform_2, window_bounds = array<i64: 1, 128>}]} {
    %c136 = arith.constant 136 : index
    %c0 = arith.constant 0 : index
    %0 = vector.load %arg2[%c136, %c0] : memref<168x32xf32, #tpu.memory_space<vmem>>, vector<32x32xf32>
    %c0_0 = arith.constant 0 : index
    %c0_1 = arith.constant 0 : index
    %1 = vector.load %arg2[%c0_0, %c0_1] : memref<168x32xf32, #tpu.memory_space<vmem>>, vector<32x3xf32>
    %c0_2 = arith.constant 0 : index
    %c0_3 = arith.constant 0 : index
    %2 = vector.load %arg1[%c0_2, %c0_3] : memref<3x128xf32, #tpu.memory_space<vmem>>, vector<3x128xf32>
    %cst = arith.constant dense<0.000000e+00> : vector<32x128xf32>
    %3 = tpu.matmul %1, %2, %cst {dimension_numbers = #tpu.dot_dimension_numbers<[1], [0], [0], [1], [0, 0, 1, 1], [], []>} : vector<32x3xf32>, vector<3x128xf32>, vector<32x128xf32> -> vector<32x128xf32>
    %4 = vector.extract_strided_slice %0 {offsets = [0, 0], sizes = [32, 1], strides = [1, 1]} : vector<32x32xf32> to vector<32x1xf32>
    %5 = vector.broadcast %4 : vector<32x1xf32> to vector<32x128xf32>
    %6 = arith.addf %3, %5 : vector<32x128xf32>
    %cst_4 = arith.constant 0.000000e+00 : f32
    %7 = vector.broadcast %cst_4 : f32 to vector<32x128xf32>
    %8 = arith.maximumf %6, %7 : vector<32x128xf32>
    %c32 = arith.constant 32 : index
    %c0_5 = arith.constant 0 : index
    %9 = vector.load %arg2[%c32, %c0_5] : memref<168x32xf32, #tpu.memory_space<vmem>>, vector<32x32xf32>
    %cst_6 = arith.constant dense<0.000000e+00> : vector<32x128xf32>
    %10 = tpu.matmul %9, %8, %cst_6 {dimension_numbers = #tpu.dot_dimension_numbers<[1], [0], [0], [1], [0, 0, 1, 1], [], []>} : vector<32x32xf32>, vector<32x128xf32>, vector<32x128xf32> -> vector<32x128xf32>
    %11 = vector.extract_strided_slice %0 {offsets = [0, 1], sizes = [32, 1], strides = [1, 1]} : vector<32x32xf32> to vector<32x1xf32>
    %12 = vector.broadcast %11 : vector<32x1xf32> to vector<32x128xf32>
    %13 = arith.addf %10, %12 : vector<32x128xf32>
    %cst_7 = arith.constant 0.000000e+00 : f32
    %14 = vector.broadcast %cst_7 : f32 to vector<32x128xf32>
    %15 = arith.maximumf %13, %14 : vector<32x128xf32>
    %c64 = arith.constant 64 : index
    %c0_8 = arith.constant 0 : index
    %16 = vector.load %arg2[%c64, %c0_8] : memref<168x32xf32, #tpu.memory_space<vmem>>, vector<32x32xf32>
    %cst_9 = arith.constant dense<0.000000e+00> : vector<32x128xf32>
    %17 = tpu.matmul %16, %15, %cst_9 {dimension_numbers = #tpu.dot_dimension_numbers<[1], [0], [0], [1], [0, 0, 1, 1], [], []>} : vector<32x32xf32>, vector<32x128xf32>, vector<32x128xf32> -> vector<32x128xf32>
    %18 = vector.extract_strided_slice %0 {offsets = [0, 2], sizes = [32, 1], strides = [1, 1]} : vector<32x32xf32> to vector<32x1xf32>
    %19 = vector.broadcast %18 : vector<32x1xf32> to vector<32x128xf32>
    %20 = arith.addf %17, %19 : vector<32x128xf32>
    %cst_10 = arith.constant 0.000000e+00 : f32
    %21 = vector.broadcast %cst_10 : f32 to vector<32x128xf32>
    %22 = arith.maximumf %20, %21 : vector<32x128xf32>
    %c96 = arith.constant 96 : index
    %c0_11 = arith.constant 0 : index
    %23 = vector.load %arg2[%c96, %c0_11] : memref<168x32xf32, #tpu.memory_space<vmem>>, vector<32x32xf32>
    %cst_12 = arith.constant dense<0.000000e+00> : vector<32x128xf32>
    %24 = tpu.matmul %23, %22, %cst_12 {dimension_numbers = #tpu.dot_dimension_numbers<[1], [0], [0], [1], [0, 0, 1, 1], [], []>} : vector<32x32xf32>, vector<32x128xf32>, vector<32x128xf32> -> vector<32x128xf32>
    %25 = vector.extract_strided_slice %0 {offsets = [0, 3], sizes = [32, 1], strides = [1, 1]} : vector<32x32xf32> to vector<32x1xf32>
    %26 = vector.broadcast %25 : vector<32x1xf32> to vector<32x128xf32>
    %27 = arith.addf %24, %26 : vector<32x128xf32>
    %cst_13 = arith.constant 0.000000e+00 : f32
    %28 = vector.broadcast %cst_13 : f32 to vector<32x128xf32>
    %29 = arith.maximumf %27, %28 : vector<32x128xf32>
    %c128 = arith.constant 128 : index
    %c0_14 = arith.constant 0 : index
    %30 = vector.load %arg2[%c128, %c0_14] : memref<168x32xf32, #tpu.memory_space<vmem>>, vector<8x32xf32>
    %cst_15 = arith.constant dense<0.000000e+00> : vector<8x128xf32>
    %31 = tpu.matmul %30, %29, %cst_15 {dimension_numbers = #tpu.dot_dimension_numbers<[1], [0], [0], [1], [0, 0, 1, 1], [], []>} : vector<8x32xf32>, vector<32x128xf32>, vector<8x128xf32> -> vector<8x128xf32>
    %32 = vector.extract_strided_slice %31 {offsets = [0, 0], sizes = [1, 128], strides = [1, 1]} : vector<8x128xf32> to vector<1x128xf32>
    %33 = vector.extract_strided_slice %0 {offsets = [0, 4], sizes = [1, 1], strides = [1, 1]} : vector<32x32xf32> to vector<1x1xf32>
    %34 = vector.broadcast %33 : vector<1x1xf32> to vector<1x128xf32>
    %35 = arith.addf %32, %34 : vector<1x128xf32>
    %c0_16 = arith.constant 0 : index
    %c0_17 = arith.constant 0 : index
    %36 = vector.load %arg3[%c0_16, %c0_17] : memref<1x128xf32, #tpu.memory_space<vmem>>, vector<1x128xf32>
    tpu.vector_store %arg3[%c0_16, %c0_17], %35 {strides = array<i32>} : memref<1x128xf32, #tpu.memory_space<vmem>>, vector<1x128xf32>,
    return
  }
  func.func @transform_0(%arg0: i32) -> (i32, i32) {
    %c0_i32 = arith.constant 0 : i32
    %c0_i32_0 = arith.constant 0 : i32
    return %c0_i32, %arg0 : i32, i32
  }
  func.func @transform_1(%arg0: i32) -> (i32, i32) {
    %c0_i32 = arith.constant 0 : i32
    %c0_i32_0 = arith.constant 0 : i32
    %c0_i32_1 = arith.constant 0 : i32
    return %c0_i32, %c0_i32_0 : i32, i32
  }
  func.func @transform_2(%arg0: i32) -> (i32, i32) {
    %c0_i32 = arith.constant 0 : i32
    %c0_i32_0 = arith.constant 0 : i32
    return %c0_i32, %arg0 : i32, i32
  }
}

</mosaic_0001>

<bundles_post_ra>
// kernel: tpu_custom_call.1
= control target key start
LH: loop header
LB: loop body
LE: loop exit
PB: predicated region body
PF: predicated region fallthrough
CT: control target
= control target key end

     0   :  { %vm54_vm0 = vcmask 1042432   ;;  %vm41_vm1 = vcmask 23552   ;;  %v791_v5 = vmov 0   ;;  %s935_s0 = inlined_call_operand.vmem [shape: f32[3,128], index: 0, kind: input, shape index: {}]   ;;  %s936_s1 = inlined_call_operand.vmem [shape: f32[168,32], index: 1, kind: input, shape index: {}]   ;;  %s937_s2 = inlined_call_operand.hbm [shape: f32[1,128], index: 2, kind: output, shape index: {}]  }
   0x1   :  { %v20_v0 = vld [vmem:[%s935_s0] sm:$0x7]  ;;  %v17_v2 = vld [vmem:[%s936_s1 + $0x8] sm:$0xff]  ;;  %v18_v3 = vld [vmem:[%s936_s1 + $0x10] sm:$0xff]  ;;  %757 = vset.pattern.permute.xlu0 %v791_v5 }
   0x2   :  { %v16_v1 = vld [vmem:[%s936_s1] sm:$0xff]  ;;  %657 = vmatprep.subr.msk.mxu0 %vm54_vm0, %v20_v0  ;;  %v831_v4 = vld [vmem:[%s936_s1 + $0x88] sm:$0xff]  ;;  %v836_v6 = vld [vmem:[%s936_s1 + $0x98] sm:$0xff] }
   0x3   :  { %659 = vmatprep.mubr.msk.f32.mxu0 %vm41_vm1, %v16_v1  ;;  %658 = vmatpush3.msk.msra.mxu0 %vm54_vm0, %v20_v0 }
   0x4   :  { %660 = vmatmul.mubr.msk.f32.vlgmr.msra.gmra.mrb[0].mxu0 %vm41_vm1, %v17_v2  ;;  %23 = vperm.xlu0 %757, %v831_v4  }
   0x5   :  { %7 = vsyncpa [#allocation3], 0  ;;  %662 = vmatprep.mubr.msk.f32.mxu0 %vm41_vm1, %v18_v3  ;;  %v19_v7 = vld [vmem:[%s936_s1 + $0x18] sm:$0xff]  ;;  %758 = vset.pattern.permute.xlu1 %v791_v5  ;;  %v847_v8 = vld [vmem:[%s936_s1 + $0x90] sm:$0xff]  ;;  %vm167_vm2 = vcmask 261120   ;;  %v792_v11 = vmov 1  }
   0x6   :  { %33 = vperm.xlu1 %758, %v836_v6   ;;  %v853_v9 = vld [vmem:[%s936_s1 + $0xa0] sm:$0xff]  ;;  %v148_v30 = vld [vmem:[%s936_s1 + $0x28] sm:$0xff]  ;;  %v149_v31 = vld [vmem:[%s936_s1 + $0x30] sm:$0xff]  ;;  %v793_v34 = vmov 2   ;;  %v794_v57 = vmov 3   ;;  %vm796_vm3 = vmmov 0  }
   0x7   :  { %v147_v10 = vld [vmem:[%s936_s1 + $0x20] sm:$0xff]  ;;  %v150_v32 = vld [vmem:[%s936_s1 + $0x38] sm:$0xff]  ;;  %v270_v53 = vld [vmem:[%s936_s1 + $0x48] sm:$0xff]  ;;  %s799_s23 = smov [#allocation2]  }
   0x8   :  { %663 = vmatmul.mubr.msk.f32.gmra.mrb[2].mxu0 %vm41_vm1, %v19_v7  ;;  %28 = vperm.xlu0 %757, %v847_v8   ;;  %v269_v33 = vld [vmem:[%s936_s1 + $0x40] sm:$0xff]  ;;  %v271_v54 = vld [vmem:[%s936_s1 + $0x50] sm:$0xff]  ;;  %v272_v55 = vld [vmem:[%s936_s1 + $0x58] sm:$0xff]  ;;  %s597_s24 = sshll.u32 %s799_s23, 4  ;;  %s598_s24 = int_to_ptr.vmem [resolvable:$true] %s597_s24 }
   0x9   :  { %673 = vmatprep.mubr.msk.f32.mxu1 %vm167_vm2, %v147_v10  ;;  %687 = vmatprep.mubr.msk.f32.mxu0 %vm167_vm2, %v269_v33  ;;  %v390_v56 = vld [vmem:[%s936_s1 + $0x60] sm:$0xff]  ;;  %s767_s25 = scalar_lea.vmem %s598_s24, 16  ;;  %s771_s26 = scalar_lea.vmem %s598_s24, 32 }
   0xa   :  { %38 = vperm.xlu1 %758, %v853_v9   ;;  %p768_p0 = scmp.ne.s32.totalorder %s598_s24, %s767_s25  ;;  %p772_p1 = scmp.lt.s32.totalorder %s598_s24, %s598_s24 }
   0xb   :  { %p773_p2 = scmp.lt.s32.totalorder %s771_s26, %s767_s25 }
   0xc   :  { %759 = vset.pattern.permute.xlu0 %v792_v11 }
   0xd   :  { %152 = vperm.xlu0 %759, %v831_v4   ;;  %p774_p3 = por %p773_p2, %p772_p1 }
   0xe   :  { %760 = vset.pattern.permute.xlu1 %v792_v11 }
   0xf   :  { %156 = vperm.xlu1 %760, %v847_v8   ;;  %p775_p4 = pnand %p774_p3, %p768_p0 }
  0x11   :  { %164 = vperm.xlu0 %759, %v853_v9  }
  0x13   :  { %160 = vperm.xlu1 %760, %v836_v6  }
  0x15   :  { %762 = vset.pattern.permute.xlu0 %v793_v34 }
  0x16   :  { %278 = vperm.xlu0 %762, %v847_v8  }
  0x17   :  { %761 = vset.pattern.permute.xlu1 %v793_v34 }
  0x18   :  { %274 = vperm.xlu1 %761, %v831_v4  }
  0x1a   :  { %763 = vset.pattern.permute.xlu0 %v794_v57 }
  0x1b   :  { %395 = vperm.xlu0 %763, %v831_v4  }
  0x1c   :  { %282 = vperm.xlu1 %761, %v836_v6  }
  0x1f   :  { %407 = vperm.xlu0 %763, %v853_v9  }
  0x20   :  { %286 = vperm.xlu1 %761, %v853_v9   ;;  %v391_v9 = vld [vmem:[%s936_s1 + $0x68] sm:$0xff] }
  0x24   :  { %764 = vset.pattern.permute.xlu1 %v794_v57 }
  0x25   :  { %399 = vperm.xlu1 %764, %v847_v8  }
  0x29   :  { %403 = vperm.xlu1 %764, %v836_v6  }
  0x83   :  { %v24_v12 = vpop.permute.xlu0 %23 }
  0x85   :  { %v34_v13 = vpop.permute.xlu1 %33 }
  0x87   :  { %v29_v14 = vpop.permute.xlu0 %28 }
  0x89   :  { %v39_v21 = vpop.permute.xlu1 %38 }
  0x8c   :  { %v153_v35 = vpop.permute.xlu0 %152 }
  0x8e   :  { %v157_v36 = vpop.permute.xlu1 %156 }
  0x90   :  { %v165_v43 = vpop.permute.xlu0 %164 }
  0x92   :  { %v161_v45 = vpop.permute.xlu1 %160 }
  0x95   :  { %v279_v60 = vpop.permute.xlu0 %278 }
  0x97   :  { %v275_v58 = vpop.permute.xlu1 %274 }
  0x9b   :  { %v283_v59 = vpop.permute.xlu1 %282 }
  0x9f   :  { %v287_v2 = vpop.permute.xlu1 %286 }
  0xd7   :  { %v661_v15 = vpop.f32.mrb[0].mxu0 }
  0xd8   :  { %v130_v16 = vadd.f32 %v661_v15, %v29_v14  ;;  %v124_v17 = vpop.f32.mrb[1].mxu0  ;;  %v392_v14 = vld [vmem:[%s936_s1 + $0x70] sm:$0xff]  ;;  %v393_v15 = vld [vmem:[%s936_s1 + $0x78] sm:$0xff] }
  0xd9   :  { %v125_v18 = vadd.f32 %v124_v17, %v24_v12  ;;  %v797_v17 = vmov 0.0  }
  0xda   :  { %v144_v19 = vmax.f32 %v130_v16, 0.0  ;;  %v795_v16 = vmov 0.0|0.0  }
  0xdb   :  { %v143_v20 = vmax.f32 %v125_v18, 0.0  ;;  %v664_v22 = vpop.f32.mrb[2].mxu0  ;;  %v798_v18 = vmov 4  }
  0xdc   :  { %v140_v23 = vadd.f32 %v664_v22, %v39_v21  ;;  %v134_v24 = vpop.f32.mrb[3].mxu0  ;;  %765 = vset.pattern.permute.xlu1 %v798_v18  ;;  %766 = vset.pattern.permute.xlu0 %v798_v18 }
  0xdd   :  { %v135_v25 = vadd.f32 %v134_v24, %v34_v13  ;;  %v718_v26 = vpack.c.bf16 %v144_v19, %v143_v20  ;;  %586 = vperm.xlu1 %765, %v831_v4   ;;  %v396_v19 = vpop.permute.xlu0 %395  ;;  %v400_v20 = vpop.permute.xlu1 %399 }
  0xde   :  { %v146_v27 = vmax.f32 %v140_v23, 0.0 }
  0xdf   :  { %v145_v28 = vmax.f32 %v135_v25, 0.0  ;;  %719 = vmatprep.subr.bf16.mxu1 %v718_v26 }
  0xe0   :  { %721 = vmatpush3.bf16.msra.mxu1 %v718_v26 }
  0xe1   :  { %v722_v29 = vpack.c.bf16 %v146_v27, %v145_v28  ;;  %v408_v27 = vpop.permute.xlu0 %407 }
  0xe3   :  { %723 = vmatprep.subr.bf16.mxu1 %v722_v29 }
  0xe4   :  { %725 = vmatpush3.bf16.msra.mxu1 %v722_v29  ;;  %v404_v29 = vpop.permute.xlu1 %403 }
  0xe7   :  { %674 = vmatmul.mubr.msk.f32.vlgmr.msra.gmra.mrb[0].mxu1 %vm167_vm2, %v148_v30 }
  0xe8   :  { %676 = vmatprep.mubr.msk.f32.mxu1 %vm167_vm2, %v149_v31 }
  0xeb   :  { %677 = vmatmul.mubr.msk.f32.gmra.mrb[2].mxu1 %vm167_vm2, %v150_v32 }
  0xec   :  { %701 = vmatprep.mubr.msk.f32.mxu1 %vm167_vm2, %v390_v56 }
 0x1ba   :  { %v675_v37 = vpop.f32.mrb[0].mxu1 }
 0x1bb   :  { %v252_v38 = vadd.f32 %v675_v37, %v157_v36  ;;  %v246_v39 = vpop.f32.mrb[1].mxu1  ;;  %v511_v36 = vld [vmem:[%s936_s1 + $0x80] sm:$0xff]  ;;  %v587_v37 = vpop.permute.xlu1 %586 }
 0x1bc   :  { %v247_v40 = vadd.f32 %v246_v39, %v153_v35 }
 0x1bd   :  { %v266_v41 = vmax.f32 %v252_v38, 0.0 }
 0x1be   :  { %v265_v42 = vmax.f32 %v247_v40, 0.0  ;;  %v678_v44 = vpop.f32.mrb[2].mxu1 }
 0x1bf   :  { %v262_v46 = vadd.f32 %v678_v44, %v165_v43  ;;  %v256_v47 = vpop.f32.mrb[3].mxu1 }
 0x1c0   :  { %v726_v48 = vpack.c.bf16 %v266_v41, %v265_v42  ;;  %v257_v49 = vadd.f32 %v256_v47, %v161_v45 }
 0x1c1   :  { %v268_v50 = vmax.f32 %v262_v46, 0.0 }
 0x1c2   :  { %v267_v51 = vmax.f32 %v257_v49, 0.0  ;;  %727 = vmatprep.subr.bf16.mxu0 %v726_v48 }
 0x1c3   :  { %729 = vmatpush3.bf16.msra.mxu0 %v726_v48 }
 0x1c4   :  { %v730_v52 = vpack.c.bf16 %v268_v50, %v267_v51 }
 0x1c6   :  { %731 = vmatprep.subr.bf16.mxu0 %v730_v52 }
 0x1c7   :  { %733 = vmatpush3.bf16.msra.mxu0 %v730_v52 }
 0x1c8   :  { %742 = vmatprep.subr.bf16.mxu0 %v795_v16 }
 0x1ca   :  { %688 = vmatmul.mubr.msk.f32.vlgmr.msra.gmra.mrb[4].mxu0 %vm167_vm2, %v270_v53 }
 0x1cb   :  { %690 = vmatprep.mubr.msk.f32.mxu0 %vm167_vm2, %v271_v54 }
 0x1ce   :  { %691 = vmatmul.mubr.msk.f32.gmra.mrb[6].mxu0 %vm167_vm2, %v272_v55 }
 0x1cf   :  { %715 = vmatprep.mubr.msk.f32.mxu0 %vm796_vm3, %v797_v17 }
 0x29d   :  { %v689_v61 = vpop.f32.mrb[4].mxu0 }
 0x29e   :  { %v373_v62 = vadd.f32 %v689_v61, %v279_v60  ;;  %v367_v63 = vpop.f32.mrb[5].mxu0 }
 0x29f   :  { %v368_v0 = vadd.f32 %v367_v63, %v275_v58 }
 0x2a0   :  { %v387_v1 = vmax.f32 %v373_v62, 0.0 }
 0x2a1   :  { %v386_v3 = vmax.f32 %v368_v0, 0.0  ;;  %v692_v5 = vpop.f32.mrb[6].mxu0 }
 0x2a2   :  { %v383_v7 = vadd.f32 %v692_v5, %v287_v2  ;;  %v377_v10 = vpop.f32.mrb[7].mxu0 }
 0x2a3   :  { %v734_v8 = vpack.c.bf16 %v387_v1, %v386_v3  ;;  %v378_v11 = vadd.f32 %v377_v10, %v283_v59 }
 0x2a4   :  { %v389_v12 = vmax.f32 %v383_v7, 0.0 }
 0x2a5   :  { %v388_v13 = vmax.f32 %v378_v11, 0.0  ;;  %735 = vmatprep.subr.bf16.mxu1 %v734_v8 }
 0x2a6   :  { %737 = vmatpush3.bf16.msra.mxu1 %v734_v8 }
 0x2a7   :  { %v738_v6 = vpack.c.bf16 %v389_v12, %v388_v13 }
 0x2a9   :  { %739 = vmatprep.subr.bf16.mxu1 %v738_v6 }
 0x2aa   :  { %741 = vmatpush3.bf16.msra.mxu1 %v738_v6 }
 0x2ad   :  { %702 = vmatmul.mubr.msk.f32.vlgmr.msra.gmra.mrb[4].mxu1 %vm167_vm2, %v391_v9 }
 0x2ae   :  { %704 = vmatprep.mubr.msk.f32.mxu1 %vm167_vm2, %v392_v14 }
 0x2b1   :  { %705 = vmatmul.mubr.msk.f32.gmra.mrb[6].mxu1 %vm167_vm2, %v393_v15 }
 0x380   :  { %v703_v21 = vpop.f32.mrb[4].mxu1 }
 0x381   :  { %v494_v22 = vadd.f32 %v703_v21, %v400_v20  ;;  %v488_v23 = vpop.f32.mrb[5].mxu1 }
 0x382   :  { %v489_v24 = vadd.f32 %v488_v23, %v396_v19 }
 0x383   :  { %v508_v25 = vmax.f32 %v494_v22, 0.0 }
 0x384   :  { %v507_v26 = vmax.f32 %v489_v24, 0.0  ;;  %v706_v28 = vpop.f32.mrb[6].mxu1 }
 0x385   :  { %v504_v30 = vadd.f32 %v706_v28, %v408_v27  ;;  %v498_v31 = vpop.f32.mrb[7].mxu1 }
 0x386   :  { %v743_v32 = vpack.c.bf16 %v508_v25, %v507_v26  ;;  %v499_v33 = vadd.f32 %v498_v31, %v404_v29 }
 0x387   :  { %v510_v34 = vmax.f32 %v504_v30, 0.0 }
 0x388   :  { %v509_v35 = vmax.f32 %v499_v33, 0.0  ;;  %744 = vmatpush3.bf16.msra.mxu0 %v743_v32 }
 0x389   :  { %745 = vmatprep.subr.bf16.mxu0 %v795_v16 }
 0x38a   :  { %v746_v4 = vpack.c.bf16 %v510_v34, %v509_v35 }
 0x38c   :  { %747 = vmatpush3.bf16.msra.mxu0 %v746_v4 }
 0x38f   :  { %716 = vmatmul.mubr.msk.f32.vlgmr.msra.gmra.mrb[8].mxu0 %vm167_vm2, %v511_v36 }
 0x462   :  { %v581_v38 = vpop.f32.mrb[8].mxu0 }
 0x463   :  { %v589_v39 = vadd.f32 %v587_v37, %v581_v38  ;;  %v717_v40 = vpop.f32.mrb[9].mxu0 }
 0x465   :  { %590 = vst [vmem:[#allocation2] sm:$0x1] %v589_v39 }
 0x466   :  { %778 = shalt.err (!%p775_p4)
}
 0x467   :  { %s779_s28 = scalar_lea.hbm %s937_s2, 16 }
 0x468   :  { %p780_p5 = scmp.ne.s32.totalorder %s937_s2, %s779_s28  ;;  %p783_p6 = scmp.lt.u32.totalorder %s779_s28, %s937_s2 }
 0x46a   :  { %p785_p7 = pnand %p783_p6, %p780_p5 }
 0x46c   :  { %788 = shalt.err (!%p785_p7)
}
 0x46d   :  { %600 = dma.vmem_to_hbm [thread:$0]  %s598_s24, 16, %s937_s2, [#allocation3]  }
 0x46e   :  { %789 = dma.done.wait [#allocation3], 16  }
 0x46f   :  { %790 = vsyncadd [#allocation3], 4294967280 }
 0x470   :  { %604 = vsyncpa [#allocation3], 1 }

</bundles_post_ra>
